<compile_context>
chip_gen: v7x
topology: tpu7x:2x2x1
jax: 0.10.0
libtpu: 0.0.40
codegen_flags: <defaults>
</compile_context>

<pallas_src>
import functools

import jax
import jax.numpy as jnp
from jax.experimental import pallas as pl
from jax.experimental.pallas import tpu as pltpu

ALPHA = 0.2   # LeakyReLU negative slope
EPS = 1e-5    # BatchNorm eps (PyTorch default)

_MATMUL_TM = 512     # row tile for matmul/fused-stats pass (safe on v5e/v6e/v7x)
_ELEM_TM = 1024      # row tile for standalone elementwise passes (general path)
_COL_TILE_CAP = 512  # lane-dim tile cap (multiple of 128)


def _round_up(x, m):
    return ((x + m - 1) // m) * m


def _pick_col_tile(n, cap=_COL_TILE_CAP):
    """Largest of (cap, 256, 128) that divides n (n is a multiple of 128)."""
    for t in (cap, 256, 128):
        if t <= n and n % t == 0:
            return t
    return n


# ---------------------------------------------------------------------------
# Pallas kernels
# ---------------------------------------------------------------------------

def _matmul_stats_kernel(x_ref, w_ref, y_ref, sum_ref, sq_ref):
    """(tm, Cin) x (Cin, tn) matmul tile + per-column sum / sumsq accumulation.

    Grid = (nsplit, Np // tn, rows-per-split); the last (row) axis is the
    reduction axis for the statistics accumulators (resident output blocks).
    """
    @pl.when(pl.program_id(2) == 0)
    def _():
        sum_ref[...] = jnp.zeros_like(sum_ref)
        sq_ref[...] = jnp.zeros_like(sq_ref)

    y = jnp.dot(x_ref[...], w_ref[...], preferred_element_type=jnp.float32)
    y_ref[...] = y
    sum_ref[0:1, :] += jnp.sum(y, axis=0, keepdims=True)
    sq_ref[0:1, :] += jnp.sum(y * y, axis=0, keepdims=True)


def _pallas_matmul_stats(x_flat, w_flat, tm):
    """x_flat: (M, Cin) f32, w_flat: (Cin, CK) f32.

    Returns (y, col_sum, col_sumsq):
      y:         (Mp, Np) f32  (rows / columns zero-padded to tile multiples)
      col_sum:   (Np,)  per-column sum over all real rows
      col_sumsq: (Np,)  per-column sum of squares over all real rows
    """
    M, Cin = x_flat.shape
    CK = w_flat.shape[1]
    Np = _round_up(CK, 128)
    tn = _pick_col_tile(Np)

    # Split the row range in two so the stats reduction (and the matmul) can be
    # sharded across both TensorCores on megacore parts (v7x); on single-TC
    # parts the extra 'parallel' axis is just an outer loop.
    nsplit = 2 if M >= 4 * tm else 1
    Mp = _round_up(M, nsplit * tm)
    n_i = Mp // (nsplit * tm)

    xp = jnp.pad(x_flat, ((0, Mp - M), (0, 0))) if Mp != M else x_flat
    wp = jnp.pad(w_flat, ((0, 0), (0, Np - CK))) if Np != CK else w_flat

    y, s, sq = pl.pallas_call(
        _matmul_stats_kernel,
        out_shape=(jax.ShapeDtypeStruct((Mp, Np), jnp.float32),
                   jax.ShapeDtypeStruct((8 * nsplit, Np), jnp.float32),
                   jax.ShapeDtypeStruct((8 * nsplit, Np), jnp.float32)),
        grid_spec=pltpu.PrefetchScalarGridSpec(
            num_scalar_prefetch=0,
            grid=(nsplit, Np // tn, n_i),
            in_specs=[
                pl.BlockSpec((tm, Cin), lambda c, j, i: (c * n_i + i, 0)),
                pl.BlockSpec((Cin, tn), lambda c, j, i: (0, j)),
            ],
            out_specs=(
                pl.BlockSpec((tm, tn), lambda c, j, i: (c * n_i + i, j)),
                pl.BlockSpec((8, tn), lambda c, j, i: (c, j)),
                pl.BlockSpec((8, tn), lambda c, j, i: (c, j)),
            )),
        compiler_params=pltpu.CompilerParams(
            dimension_semantics=("parallel", "parallel", "arbitrary")),
    )(xp, wp)
    return y, jnp.sum(s, axis=0), jnp.sum(sq, axis=0)


def _stats_kernel(y_ref, sum_ref, sq_ref):
    # Accumulator pattern: same output block across the whole (row) grid.
    @pl.when(pl.program_id(0) == 0)
    def _():
        sum_ref[...] = jnp.zeros_like(sum_ref)
        sq_ref[...] = jnp.zeros_like(sq_ref)

    y = y_ref[...]
    sum_ref[...] += jnp.sum(y, axis=0, keepdims=True)
    sq_ref[...] += jnp.sum(y * y, axis=0, keepdims=True)


def _pallas_channel_stats(y, tm):
    """y: (M, C) f32 -> (sum, sumsq), each (1, C).  Zero rows are harmless."""
    M, C = y.shape
    tm = min(tm, _round_up(M, 8))
    Mp = _round_up(M, tm)
    if Mp != M:
        y = jnp.pad(y, ((0, Mp - M), (0, 0)))
    s, sq = pl.pallas_call(
        _stats_kernel,
        out_shape=(jax.ShapeDtypeStruct((1, C), jnp.float32),
                   jax.ShapeDtypeStruct((1, C), jnp.float32)),
        grid_spec=pltpu.PrefetchScalarGridSpec(
            num_scalar_prefetch=0,
            grid=(Mp // tm,),
            in_specs=[pl.BlockSpec((tm, C), lambda i: (i, 0))],
            out_specs=(pl.BlockSpec((1, C), lambda i: (0, 0)),
                       pl.BlockSpec((1, C), lambda i: (0, 0)))),
        compiler_params=pltpu.CompilerParams(
            dimension_semantics=("arbitrary",)),
    )(y)
    return s, sq


def _bn_act_kernel(y_ref, scale_ref, shift_ref, o_ref, *, activation):
    y = y_ref[...] * scale_ref[...] + shift_ref[...]
    if activation:
        y = jnp.where(y >= 0, y, ALPHA * y)
    o_ref[...] = y


def _pallas_bn_act(y, scale, shift, activation, *, tm):
    """y: (M, C); scale/shift: (1, C) per-column affine.  Returns (M, C)."""
    M, C = y.shape
    tm = min(tm, _round_up(M, 8))
    Mp = _round_up(M, tm)
    if Mp != M:
        y = jnp.pad(y, ((0, Mp - M), (0, 0)))
    tn = _pick_col_tile(C) if C % 128 == 0 else C
    out = pl.pallas_call(
        functools.partial(_bn_act_kernel, activation=activation),
        out_shape=jax.ShapeDtypeStruct((Mp, C), jnp.float32),
        grid_spec=pltpu.PrefetchScalarGridSpec(
            num_scalar_prefetch=0,
            grid=(Mp // tm, C // tn),
            in_specs=[pl.BlockSpec((tm, tn), lambda i, j: (i, j)),
                      pl.BlockSpec((1, tn), lambda i, j: (0, j)),
                      pl.BlockSpec((1, tn), lambda i, j: (0, j))],
            out_specs=pl.BlockSpec((tm, tn), lambda i, j: (i, j))),
        compiler_params=pltpu.CompilerParams(
            dimension_semantics=("parallel", "parallel")),
    )(y, scale, shift)
    return out[:M]


# ---------------------------------------------------------------------------
# col2im for the general (overlapping) case: dense shifted adds, no scatter HLOs
# ---------------------------------------------------------------------------

def _col2im(y_cols, S, P, Do, Ho, Wo):
    """y_cols: (N, Din, Hin, Win, Cout, Kd, Kh, Kw) -> (N, Do, Ho, Wo, Cout)."""
    N, Din, Hin, Win, Cout, Kd, Kh, Kw = y_cols.shape
    fD = (Din - 1) * S + Kd
    fH = (Hin - 1) * S + Kh
    fW = (Win - 1) * S + Kw
    acc = jnp.zeros((N, fD, fH, fW, Cout), jnp.float32)
    for kd in range(Kd):
        for kh in range(Kh):
            for kw in range(Kw):
                contrib = y_cols[:, :, :, :, :, kd, kh, kw]   # (N,Din,Hin,Win,C)
                # dilate by S via interior padding (pure layout, no scatter)
                z = contrib.reshape(N, Din, 1, Hin, 1, Win, 1, Cout)
                z = jnp.pad(z, ((0, 0), (0, 0), (0, S - 1), (0, 0), (0, S - 1),
                                (0, 0), (0, S - 1), (0, 0)))
                z = z.reshape(N, Din * S, Hin * S, Win * S, Cout)
                # shift by the tap offset inside the full canvas
                z = z[:, :fD - kd, :fH - kh, :fW - kw, :]
                z = jnp.pad(z, ((0, 0),
                                (kd, fD - kd - z.shape[1]),
                                (kh, fH - kh - z.shape[2]),
                                (kw, fW - kw - z.shape[3]),
                                (0, 0)))
                acc = acc + z
    return acc[:, P:P + Do, P:P + Ho, P:P + Wo, :]


# ---------------------------------------------------------------------------
# TransConv3dBn forward
# ---------------------------------------------------------------------------

def trans_conv3d_bn(x, weight, gamma, beta, *, stride, padding, activation=True):
    """ConvTranspose3d(bias=False) -> BatchNorm3d (training-mode batch stats,
    eps=1e-5, affine) -> LeakyReLU(0.2) if activation.

    x:      (N, Cin, Din, Hin, Win)   NCDHW (PyTorch)
    weight: (Cin, Cout, kD, kH, kW)   PyTorch ConvTranspose3d weight
    gamma, beta: (Cout,)
    returns (N, Cout, Do, Ho, Wo)     NCDHW
    """
    N, Cin, Din, Hin, Win = x.shape
    _, Cout, Kd, Kh, Kw = weight.shape
    S, P = stride, padding
    Do = (Din - 1) * S - 2 * P + Kd
    Ho = (Hin - 1) * S - 2 * P + Kh
    Wo = (Win - 1) * S - 2 * P + Kw
    K3 = Kd * Kh * Kw
    CK = Cout * K3

    # flatten channels-last; pad the (tiny) contraction dim to a sublane multiple
    x_flat = jnp.transpose(x, (0, 2, 3, 4, 1)).reshape(-1, Cin).astype(jnp.float32)
    w_flat = weight.reshape(Cin, CK).astype(jnp.float32)
    Cin_p = _round_up(Cin, 8)
    if Cin_p != Cin:
        x_flat = jnp.pad(x_flat, ((0, 0), (0, Cin_p - Cin)))
        w_flat = jnp.pad(w_flat, ((0, Cin_p - Cin), (0, 0)))

    M = x_flat.shape[0]
    tm = min(_MATMUL_TM, _round_up(M, 8))

    # TODO(synk): for much larger Cin/Cout, cast matmul operands to bf16
    # (preferred_element_type=f32) and add a K grid axis with a VMEM accumulator.
    y_full, col_s, col_sq = _pallas_matmul_stats(x_flat, w_flat, tm)
    Np = y_full.shape[1]

    fast = (P == 0) and (S == Kd == Kh == Kw)
    if fast:
        # stride == kernel, padding == 0  =>  col2im is overlap-free: the matmul
        # columns ARE the output (pure layout).  Stats were fused into the matmul.
        count = M * K3                                    # == N * Do * Ho * Wo
        ch_sum = col_s[:CK].reshape(Cout, K3).sum(axis=1)
        ch_sq = col_sq[:CK].reshape(Cout, K3).sum(axis=1)
        mean = ch_sum / count
        # TODO(synk): E[x^2]-E[x]^2 can cancel when |mean| >> std; a shifted
        # two-pass would be more robust at the cost of one extra HBM read.
        var = jnp.maximum(ch_sq / count - mean * mean, 0.0)
        scale_c = gamma.astype(jnp.float32) / jnp.sqrt(var + EPS)
        shift_c = beta.astype(jnp.float32) - mean * scale_c
        scale_cols = jnp.repeat(scale_c, K3)              # column order (c,kd,kh,kw)
        shift_cols = jnp.repeat(shift_c, K3)
        if Np != CK:
            scale_cols = jnp.pad(scale_cols, (0, Np - CK))
            shift_cols = jnp.pad(shift_cols, (0, Np - CK))

        y_bn = _pallas_bn_act(y_full, scale_cols.reshape(1, Np),
                              shift_cols.reshape(1, Np), activation, tm=tm)
        y_bn = y_bn[:M, :CK].reshape(N, Din, Hin, Win, Cout, Kd, Kh, Kw)
        # single layout pass: (n, id, kd, ih, kh, iw, kw) -> NCDHW
        out = jnp.transpose(y_bn, (0, 4, 1, 5, 2, 6, 3, 7))
        return out.reshape(N, Cout, Do, Ho, Wo)

    # ---- general path (overlapping taps / nonzero padding) ----
    # TODO(synk): this fallback still materializes the col2im canvas in plain
    # JAX (dense adds) and uses lane-sparse (M, Cout) tiles when Cout < 128.
    y_cols = y_full[:M, :CK].reshape(N, Din, Hin, Win, Cout, Kd, Kh, Kw)
    out_cl = _col2im(y_cols, S, P, Do, Ho, Wo)            # (N, Do, Ho, Wo, Cout)

    M2 = N * Do * Ho * Wo
    y2 = out_cl.reshape(M2, Cout)
    tm_e = min(_ELEM_TM, _round_up(M2, 8))
    Mp2 = _round_up(M2, tm_e)
    if Mp2 != M2:
        y2 = jnp.pad(y2, ((0, Mp2 - M2), (0, 0)))         # pad once, reuse below

    s, sq = _pallas_channel_stats(y2, tm_e)
    mean = s[0] / M2
    var = jnp.maximum(sq[0] / M2 - mean * mean, 0.0)
    scale_c = gamma.astype(jnp.float32) / jnp.sqrt(var + EPS)
    shift_c = beta.astype(jnp.float32) - mean * scale_c
    y3 = _pallas_bn_act(y2, scale_c.reshape(1, Cout), shift_c.reshape(1, Cout),
                        activation, tm=tm_e)
    y3 = y3[:M2].reshape(N, Do, Ho, Wo, Cout)
    # TODO(synk): running_mean/running_var buffer update (momentum) not modeled.
    return jnp.transpose(y3, (0, 4, 1, 2, 3))             # back to NCDHW


# ---------------------------------------------------------------------------
# Pure-JAX reference (independent formulation) + demo
# ---------------------------------------------------------------------------

def _reference(x, weight, gamma, beta, *, stride, padding, activation):
    K = weight.shape[2]
    S, P = stride, padding
    w_t = jnp.transpose(weight[:, :, ::-1, ::-1, ::-1], (1, 0, 2, 3, 4))
    y = jax.lax.conv_general_dilated(
        x, w_t, window_strides=(1, 1, 1),
        padding=[(K - 1 - P, K - 1 - P)] * 3,
        lhs_dilation=(S, S, S),
        dimension_numbers=('NCDHW', 'OIDHW', 'NCDHW'))
    mean = y.mean(axis=(0, 2, 3, 4), keepdims=True)
    var = y.var(axis=(0, 2, 3, 4), keepdims=True)
    yn = (y - mean) / jnp.sqrt(var + EPS)
    yn = yn * gamma.reshape(1, -1, 1, 1, 1) + beta.reshape(1, -1, 1, 1, 1)
    if activation:
        yn = jnp.where(yn >= 0, yn, ALPHA * yn)
    return yn


if __name__ == "__main__":
    key = jax.random.PRNGKey(0)
    k1, k2, k3, k4 = jax.random.split(key, 4)

    # Config 1 (fast path): TransConv3dBn(8, 16, kernel_size=2, strides=2, padding=0)
    N, Cin, D = 2, 8, 4
    Cout, K, S, P = 16, 2, 2, 0
    x = jax.random.normal(k1, (N, Cin, D, D, D), dtype=jnp.float32)
    weight = 0.1 * jax.random.normal(k2, (Cin, Cout, K, K, K), dtype=jnp.float32)
    gamma = jnp.ones((Cout,), jnp.float32)   # BatchNorm3d default weight
    beta = jnp.zeros((Cout,), jnp.float32)   # BatchNorm3d default bias

    out = trans_conv3d_bn(x, weight, gamma, beta, stride=S, padding=P,
                          activation=True)
    out = jax.block_until_ready(out)
    ref = _reference(x, weight, gamma, beta, stride=S, padding=P, activation=True)
    Dout = (D - 1) * S - 2 * P + K
    assert out.shape == (N, Cout, Dout, Dout, Dout), out.shape
    assert jnp.allclose(out, ref, rtol=1e-4, atol=1e-4), float(jnp.abs(out - ref).max())

    # Config 2 (general path, overlapping taps): kernel_size=3, stride=1, padding=1
    N2, Cin2, D2 = 1, 4, 3
    Cout2, K2, S2, P2 = 8, 3, 1, 1
    x2 = jax.random.normal(k3, (N2, Cin2, D2, D2, D2), dtype=jnp.float32)
    w2 = 0.1 * jax.random.normal(k4, (Cin2, Cout2, K2, K2, K2), dtype=jnp.float32)
    g2 = jnp.ones((Cout2,), jnp.float32)
    b2 = jnp.zeros((Cout2,), jnp.float32)
    out2 = trans_conv3d_bn(x2, w2, g2, b2, stride=S2, padding=P2, activation=True)
    out2 = jax.block_until_ready(out2)
    ref2 = _reference(x2, w2, g2, b2, stride=S2, padding=P2, activation=True)
    assert out2.shape == ref2.shape, (out2.shape, ref2.shape)
    assert jnp.allclose(out2, ref2, rtol=1e-4, atol=1e-4), float(jnp.abs(out2 - ref2).max())

    print("KERNEL_OK")
</pallas_src>

<mosaic_0001>
module attributes {stable_mosaic.version = 11 : i64} {
  func.func @_matmul_stats_kernel(%arg0: i32, %arg1: i32, %arg2: i32, %arg3: memref<128x8xf32, #tpu.memory_space<vmem>>, %arg4: memref<8x128xf32, #tpu.memory_space<vmem>>, %arg5: memref<128x128xf32, #tpu.memory_space<vmem>>, %arg6: memref<8x128xf32, #tpu.memory_space<vmem>>, %arg7: memref<8x128xf32, #tpu.memory_space<vmem>>) attributes {dimension_semantics = [#tpu.dimension_semantics<parallel>, #tpu.dimension_semantics<parallel>, #tpu.dimension_semantics<arbitrary>], iteration_bounds = array<i64: 1, 1, 1>, scalar_prefetch = 0 : i64, scratch_operands = 0 : i64, tpu.core_type = #tpu.core_type<tc>, window_params = [{transform_indices = @transform_0, window_bounds = array<i64: 128, 8>}, {transform_indices = @transform_1, window_bounds = array<i64: 8, 128>}, {transform_indices = @transform_2, window_bounds = array<i64: 128, 128>}, {transform_indices = @transform_3, window_bounds = array<i64: 8, 128>}, {transform_indices = @transform_4, window_bounds = array<i64: 8, 128>}]} {
    %c0_i32 = arith.constant 0 : i32
    %0 = arith.cmpi eq, %arg2, %c0_i32 : i32
    %1 = arith.extui %0 : i1 to i32
    %c0_i32_0 = arith.constant 0 : i32
    %2 = arith.cmpi ne, %1, %c0_i32_0 : i32
    scf.if %2 {
      %cst_16 = arith.constant 0.000000e+00 : f32
      %18 = vector.broadcast %cst_16 : f32 to vector<8x128xf32>
      %c0_17 = arith.constant 0 : index
      %c0_18 = arith.constant 0 : index
      %19 = vector.load %arg6[%c0_17, %c0_18] : memref<8x128xf32, #tpu.memory_space<vmem>>, vector<8x128xf32>
      tpu.vector_store %arg6[%c0_17, %c0_18], %18 {strides = array<i32>} : memref<8x128xf32, #tpu.memory_space<vmem>>, vector<8x128xf32>,
      %cst_19 = arith.constant 0.000000e+00 : f32
      %20 = vector.broadcast %cst_19 : f32 to vector<8x128xf32>
      %c0_20 = arith.constant 0 : index
      %c0_21 = arith.constant 0 : index
      %21 = vector.load %arg7[%c0_20, %c0_21] : memref<8x128xf32, #tpu.memory_space<vmem>>, vector<8x128xf32>
      tpu.vector_store %arg7[%c0_20, %c0_21], %20 {strides = array<i32>} : memref<8x128xf32, #tpu.memory_space<vmem>>, vector<8x128xf32>,
    } else {
    }
    %c0 = arith.constant 0 : index
    %c0_1 = arith.constant 0 : index
    %3 = vector.load %arg3[%c0, %c0_1] : memref<128x8xf32, #tpu.memory_space<vmem>>, vector<128x8xf32>
    %c0_2 = arith.constant 0 : index
    %c0_3 = arith.constant 0 : index
    %4 = vector.load %arg4[%c0_2, %c0_3] : memref<8x128xf32, #tpu.memory_space<vmem>>, vector<8x128xf32>
    %cst = arith.constant dense<0.000000e+00> : vector<128x128xf32>
    %5 = tpu.matmul %3, %4, %cst {dimension_numbers = #tpu.dot_dimension_numbers<[1], [0], [0], [1], [0, 0, 1, 1], [], []>} : vector<128x8xf32>, vector<8x128xf32>, vector<128x128xf32> -> vector<128x128xf32>
    %c0_4 = arith.constant 0 : index
    %c0_5 = arith.constant 0 : index
    %6 = vector.load %arg5[%c0_4, %c0_5] : memref<128x128xf32, #tpu.memory_space<vmem>>, vector<128x128xf32>
    tpu.vector_store %arg5[%c0_4, %c0_5], %5 {strides = array<i32>} : memref<128x128xf32, #tpu.memory_space<vmem>>, vector<128x128xf32>,
    %c0_6 = arith.constant 0 : index
    %c0_7 = arith.constant 0 : index
    %7 = vector.load %arg6[%c0_6, %c0_7] : memref<8x128xf32, #tpu.memory_space<vmem>>, vector<1x128xf32>
    %cst_8 = arith.constant dense<0.000000e+00> : vector<128xf32>
    %8 = vector.multi_reduction <add>, %5, %cst_8 [0] : vector<128x128xf32> to vector<128xf32>
    %9 = vector.shape_cast %8 : vector<128xf32> to vector<1x128xf32>
    %10 = arith.addf %7, %9 : vector<1x128xf32>
    %c0_9 = arith.constant 0 : index
    %c0_10 = arith.constant 0 : index
    %11 = vector.load %arg6[%c0_9, %c0_10] : memref<8x128xf32, #tpu.memory_space<vmem>>, vector<1x128xf32>
    tpu.vector_store %arg6[%c0_9, %c0_10], %10 {strides = array<i32>} : memref<8x128xf32, #tpu.memory_space<vmem>>, vector<1x128xf32>,
    %c0_11 = arith.constant 0 : index
    %c0_12 = arith.constant 0 : index
    %12 = vector.load %arg7[%c0_11, %c0_12] : memref<8x128xf32, #tpu.memory_space<vmem>>, vector<1x128xf32>
    %13 = arith.mulf %5, %5 : vector<128x128xf32>
    %cst_13 = arith.constant dense<0.000000e+00> : vector<128xf32>
    %14 = vector.multi_reduction <add>, %13, %cst_13 [0] : vector<128x128xf32> to vector<128xf32>
    %15 = vector.shape_cast %14 : vector<128xf32> to vector<1x128xf32>
    %16 = arith.addf %12, %15 : vector<1x128xf32>
    %c0_14 = arith.constant 0 : index
    %c0_15 = arith.constant 0 : index
    %17 = vector.load %arg7[%c0_14, %c0_15] : memref<8x128xf32, #tpu.memory_space<vmem>>, vector<1x128xf32>
    tpu.vector_store %arg7[%c0_14, %c0_15], %16 {strides = array<i32>} : memref<8x128xf32, #tpu.memory_space<vmem>>, vector<1x128xf32>,
    return
  }
  func.func @transform_0(%arg0: i32, %arg1: i32, %arg2: i32) -> (i32, i32) {
    %c1_i32 = arith.constant 1 : i32
    %0 = arith.muli %arg0, %c1_i32 : i32
    %1 = arith.addi %0, %arg2 : i32
    %c0_i32 = arith.constant 0 : i32
    %c0_i32_0 = arith.constant 0 : i32
    return %1, %c0_i32 : i32, i32
  }
  func.func @transform_1(%arg0: i32, %arg1: i32, %arg2: i32) -> (i32, i32) {
    %c0_i32 = arith.constant 0 : i32
    %c0_i32_0 = arith.constant 0 : i32
    return %c0_i32, %arg1 : i32, i32
  }
  func.func @transform_2(%arg0: i32, %arg1: i32, %arg2: i32) -> (i32, i32) {
    %c1_i32 = arith.constant 1 : i32
    %0 = arith.muli %arg0, %c1_i32 : i32
    %1 = arith.addi %0, %arg2 : i32
    %c0_i32 = arith.constant 0 : i32
    return %1, %arg1 : i32, i32
  }
  func.func @transform_3(%arg0: i32, %arg1: i32, %arg2: i32) -> (i32, i32) {
    %c0_i32 = arith.constant 0 : i32
    return %arg0, %arg1 : i32, i32
  }
  func.func @transform_4(%arg0: i32, %arg1: i32, %arg2: i32) -> (i32, i32) {
    %c0_i32 = arith.constant 0 : i32
    return %arg0, %arg1 : i32, i32
  }
}

</mosaic_0001>

<bundles_post_ra>
// kernel: tpu_custom_call.1
= control target key start
LH: loop header
LB: loop body
LE: loop exit
PB: predicated region body
PF: predicated region fallthrough
CT: control target
= control target key end

     0   :  { %10 = vsyncpa [#allocation3], 0  ;;  %vm63_vm0 = vcmask 64512   ;;  %s686_s0 = inlined_call_operand.vmem [shape: f32[128,8], index: 0, kind: input, shape index: {}]   ;;  %s687_s1 = inlined_call_operand.vmem [shape: f32[8,128], index: 1, kind: input, shape index: {}]   ;;  %s688_s2 = inlined_call_operand.hbm [shape: f32[128,128], index: 2, kind: output, shape index: {0}]   ;;  %s689_s3 = inlined_call_operand.hbm [shape: f32[8,128], index: 3, kind: output, shape index: {1}]   ;;  %s690_s4 = inlined_call_operand.hbm [shape: f32[8,128], index: 4, kind: output, shape index: {2}]  }
   0x1   :  { %v62_v0 = vld [vmem:[%s687_s1] sm:$0xff]  ;;  %v47_v2 = vld [vmem:[%s686_s0 + $0x8] sm:$0xff]  ;;  %v48_v3 = vld [vmem:[%s686_s0 + $0x10] sm:$0xff] }
   0x2   :  { %v46_v1 = vld [vmem:[%s686_s0] sm:$0xff]  ;;  %423 = vmatprep.subr.mxu0 %v62_v0  ;;  %449 = vmatprep.subr.mxu1 %v62_v0  ;;  %v55_v5 = vld [vmem:[%s686_s0 + $0x48] sm:$0xff]  ;;  %v56_v6 = vld [vmem:[%s686_s0 + $0x50] sm:$0xff] }
   0x3   :  { %425 = vmatprep.mubr.msk.f32.mxu0 %vm63_vm0, %v46_v1  ;;  %424 = vmatpush3.msra.mxu0 %v62_v0  ;;  %v54_v4 = vld [vmem:[%s686_s0 + $0x40] sm:$0xff]  ;;  %v49_v7 = vld [vmem:[%s686_s0 + $0x18] sm:$0xff] }
   0x4   :  { %426 = vmatmul.mubr.msk.f32.vlgmr.msra.gmra.mrb[0].mxu0 %vm63_vm0, %v47_v2  ;;  %450 = vmatpush3.msra.mxu1 %v62_v0  ;;  %v50_v8 = vld [vmem:[%s686_s0 + $0x20] sm:$0xff] }
   0x5   :  { %428 = vmatprep.mubr.msk.f32.mxu0 %vm63_vm0, %v48_v3  ;;  %437 = vmatprep.mubr.msk.f32.mxu1 %vm63_vm0, %v54_v4 }
   0x6   :  { %438 = vmatmul.mubr.msk.f32.vlgmr.msra.gmra.mrb[0].mxu1 %vm63_vm0, %v55_v5 }
   0x7   :  { %11 = vsyncpa [#allocation5], 0  ;;  %440 = vmatprep.mubr.msk.f32.mxu1 %vm63_vm0, %v56_v6  ;;  %v57_v9 = vld [vmem:[%s686_s0 + $0x58] sm:$0xff]  ;;  %v58_v10 = vld [vmem:[%s686_s0 + $0x60] sm:$0xff]  ;;  %v527_v17 = vmov 0.0  }
   0x8   :  { %429 = vmatmul.mubr.msk.f32.gmra.mrb[2].mxu0 %vm63_vm0, %v49_v7  ;;  %v51_v11 = vld [vmem:[%s686_s0 + $0x28] sm:$0xff]  ;;  %v52_v12 = vld [vmem:[%s686_s0 + $0x30] sm:$0xff]  ;;  %v53_v15 = vld [vmem:[%s686_s0 + $0x38] sm:$0xff]  ;;  %44 = vst [vmem:[#allocation4] sm:$0xff] %v527_v17 }
   0x9   :  { %431 = vmatprep.mubr.msk.f32.mxu0 %vm63_vm0, %v50_v8  ;;  %v59_v13 = vld [vmem:[%s686_s0 + $0x68] sm:$0xff]  ;;  %v60_v14 = vld [vmem:[%s686_s0 + $0x70] sm:$0xff]  ;;  %v61_v16 = vld [vmem:[%s686_s0 + $0x78] sm:$0xff]  ;;  %45 = vst [vmem:[#allocation6] sm:$0xff] %v527_v17  ;;  %s528_s0 = smov [#allocation2]  }
   0xa   :  { %441 = vmatmul.mubr.msk.f32.gmra.mrb[2].mxu1 %vm63_vm0, %v57_v9  ;;  %s346_s22 = sshll.u32 %s528_s0, 4  ;;  %s634_s22 = int_to_ptr.vmem [resolvable:$true] %s346_s22 }
   0xb   :  { %443 = vmatprep.mubr.msk.f32.mxu1 %vm63_vm0, %v58_v10  ;;  %s457_s1 = scalar_lea.vmem %s634_s22, 2048  ;;  %p462_p1 = scmp.lt.s32.totalorder %s634_s22, %s634_s22 }
   0xc   :  { %432 = vmatmul.mubr.msk.f32.gmra.mrb[4].mxu0 %vm63_vm0, %v51_v11  ;;  %p458_p0 = scmp.ne.s32.totalorder %s634_s22, %s457_s1  ;;  %p463_p2 = scmp.lt.s32.totalorder %s457_s1, %s457_s1 }
   0xd   :  { %434 = vmatprep.mubr.msk.f32.mxu0 %vm63_vm0, %v52_v12 }
   0xe   :  { %444 = vmatmul.mubr.msk.f32.gmra.mrb[4].mxu1 %vm63_vm0, %v59_v13  ;;  %p464_p3 = por %p463_p2, %p462_p1 }
   0xf   :  { %446 = vmatprep.mubr.msk.f32.mxu1 %vm63_vm0, %v60_v14 }
  0x10   :  { %435 = vmatmul.mubr.msk.f32.gmra.mrb[6].mxu0 %vm63_vm0, %v53_v15  ;;  %p465_p4 = pnand %p464_p3, %p458_p0 }
  0x12   :  { %447 = vmatmul.mubr.msk.f32.gmra.mrb[6].mxu1 %vm63_vm0, %v61_v16 }
  0xd7   :  { %v427_v18 = vpop.f32.mrb[0].mxu0 }
  0xd8   :  { %258 = vst [vmem:[#allocation2 + $0x8] sm:$0xff] %v427_v18  ;;  %v299_v19 = vmul.f32 %v427_v18, %v427_v18  ;;  %v178_v20 = vpop.f32.mrb[1].mxu0 }
  0xd9   :  { %257 = vst [vmem:[#allocation2] sm:$0xff] %v178_v20  ;;  %v274_v21 = vadd.f32 %v427_v18, %v178_v20  ;;  %v298_v22 = vmul.f32 %v178_v20, %v178_v20  ;;  %v625_v23 = vpop.f32.mrb[0].mxu1 }
  0xda   :  { %266 = vst [vmem:[#allocation2 + $0x48] sm:$0xff] %v625_v23  ;;  %v628_v24 = vpop.f32.mrb[1].mxu1 }
  0xdb   :  { %v314_v25 = vadd.f32 %v299_v19, %v298_v22  ;;  %v430_v26 = vpop.f32.mrb[2].mxu0  ;;  %265 = vst [vmem:[#allocation2 + $0x40] sm:$0xff] %v628_v24  ;;  %v306_v55 = vmul.f32 %v628_v24, %v628_v24 }
  0xdc   :  { %260 = vst [vmem:[#allocation2 + $0x18] sm:$0xff] %v430_v26  ;;  %v188_v27 = vpop.f32.mrb[3].mxu0  ;;  %v301_v32 = vmul.f32 %v430_v26, %v430_v26 }
  0xdd   :  { %259 = vst [vmem:[#allocation2 + $0x10] sm:$0xff] %v188_v27  ;;  %v275_v28 = vadd.f32 %v274_v21, %v188_v27  ;;  %v300_v29 = vmul.f32 %v188_v27, %v188_v27  ;;  %v631_v30 = vpop.f32.mrb[2].mxu1 }
  0xde   :  { %268 = vst [vmem:[#allocation2 + $0x58] sm:$0xff] %v631_v30  ;;  %v228_v31 = vpop.f32.mrb[3].mxu1 }
  0xdf   :  { %v315_v33 = vadd.f32 %v314_v25, %v300_v29  ;;  %v433_v34 = vpop.f32.mrb[4].mxu0  ;;  %v276_v35 = vadd.f32 %v430_v26, %v275_v28  ;;  %267 = vst [vmem:[#allocation2 + $0x50] sm:$0xff] %v228_v31 }
  0xe0   :  { %262 = vst [vmem:[#allocation2 + $0x28] sm:$0xff] %v433_v34  ;;  %v198_v36 = vpop.f32.mrb[5].mxu0  ;;  %v303_v42 = vmul.f32 %v433_v34, %v433_v34 }
  0xe1   :  { %261 = vst [vmem:[#allocation2 + $0x20] sm:$0xff] %v198_v36  ;;  %v277_v37 = vadd.f32 %v276_v35, %v198_v36  ;;  %v302_v38 = vmul.f32 %v198_v36, %v198_v36  ;;  %v316_v39 = vadd.f32 %v315_v33, %v301_v32  ;;  %v445_v40 = vpop.f32.mrb[4].mxu1 }
  0xe2   :  { %270 = vst [vmem:[#allocation2 + $0x68] sm:$0xff] %v445_v40  ;;  %v238_v41 = vpop.f32.mrb[5].mxu1 }
  0xe3   :  { %v317_v43 = vadd.f32 %v316_v39, %v302_v38  ;;  %v436_v44 = vpop.f32.mrb[6].mxu0  ;;  %v278_v45 = vadd.f32 %v433_v34, %v277_v37  ;;  %269 = vst [vmem:[#allocation2 + $0x60] sm:$0xff] %v238_v41 }
  0xe4   :  { %264 = vst [vmem:[#allocation2 + $0x38] sm:$0xff] %v436_v44  ;;  %v208_v46 = vpop.f32.mrb[7].mxu0  ;;  %v305_v52 = vmul.f32 %v436_v44, %v436_v44 }
  0xe5   :  { %263 = vst [vmem:[#allocation2 + $0x30] sm:$0xff] %v208_v46  ;;  %v279_v47 = vadd.f32 %v278_v45, %v208_v46  ;;  %v304_v48 = vmul.f32 %v208_v46, %v208_v46  ;;  %v318_v49 = vadd.f32 %v317_v43, %v303_v42  ;;  %v448_v50 = vpop.f32.mrb[6].mxu1 }
  0xe6   :  { %272 = vst [vmem:[#allocation2 + $0x78] sm:$0xff] %v448_v50  ;;  %v248_v51 = vpop.f32.mrb[7].mxu1 }
  0xe7   :  { %v280_v53 = vadd.f32 %v436_v44, %v279_v47  ;;  %v319_v54 = vadd.f32 %v318_v49, %v304_v48  ;;  %271 = vst [vmem:[#allocation2 + $0x70] sm:$0xff] %v248_v51 }
  0xe8   :  { %468 = shalt.err (!%p465_p4)
}
  0xe9   :  { %s469_s25 = scalar_lea.hbm %s688_s2, 2048 }
  0xea   :  { %p470_p5 = scmp.ne.s32.totalorder %s688_s2, %s469_s25  ;;  %p473_p6 = scmp.lt.u32.totalorder %s469_s25, %s688_s2 }
  0xec   :  { %p475_p7 = pnand %p473_p6, %p470_p5 }
  0xee   :  { %478 = shalt.err (!%p475_p7)
}
  0xef   :  { %s529_s30 = smov 128   ;;  %s530_s5 = smov 8   ;;  %v320_v56 = vadd.f32 %v319_v54, %v305_v52  ;;  %v281_v57 = vadd.f32 %v280_v53, %v628_v24  ;;  %v307_v58 = vmul.f32 %v625_v23, %v625_v23  ;;  %v308_v61 = vmul.f32 %v228_v31, %v228_v31  ;;  %v273_v25 = vld [vmem:[#allocation4] sm:$0x1]  ;;  %v297_v28 = vld [vmem:[#allocation6] sm:$0x1] }
  0xf0   :  { %352 = dma.vmem_to_hbm [thread:$0]  %s634_s22, 2048, %s688_s2, [#allocation3], %s529_s30, %s529_s30, %s530_s5   ;;  %v309_v0 = vmul.f32 %v631_v30, %v631_v30  ;;  %v310_v3 = vmul.f32 %v238_v41, %v238_v41  ;;  %v311_v6 = vmul.f32 %v445_v40, %v445_v40  ;;  %v312_v9 = vmul.f32 %v248_v51, %v248_v51 }
  0xf1   :  { %v321_v59 = vadd.f32 %v320_v56, %v306_v55  ;;  %v282_v60 = vadd.f32 %v625_v23, %v281_v57  ;;  %v313_v12 = vmul.f32 %v448_v50, %v448_v50  ;;  %s531_s2 = smov [#allocation4]   ;;  %s532_s9 = smov [#allocation6]  }
  0xf2   :  { %s359_s8 = sshll.u32 %s531_s2, 4  ;;  %s369_s10 = sshll.u32 %s532_s9, 4  ;;  %s360_s8 = int_to_ptr.vmem [resolvable:$true] %s359_s8  ;;  %s370_s10 = int_to_ptr.vmem [resolvable:$true] %s369_s10 }
  0xf3   :  { %v283_v62 = vadd.f32 %v282_v60, %v228_v31  ;;  %v322_v63 = vadd.f32 %v321_v59, %v307_v58  ;;  %s479_s11 = scalar_lea.vmem %s360_s8, 128  ;;  %p484_p9 = scmp.lt.s32.totalorder %s360_s8, %s360_s8 }
  0xf4   :  { %p480_p8 = scmp.ne.s32.totalorder %s360_s8, %s479_s11  ;;  %p485_p10 = scmp.lt.s32.totalorder %s479_s11, %s479_s11 }
  0xf5   :  { %v323_v1 = vadd.f32 %v322_v63, %v308_v61  ;;  %v284_v2 = vadd.f32 %v631_v30, %v283_v62 }
  0xf6   :  { %p486_p11 = por %p485_p10, %p484_p9 }
  0xf7   :  { %v285_v4 = vadd.f32 %v284_v2, %v238_v41  ;;  %v324_v5 = vadd.f32 %v323_v1, %v309_v0 }
  0xf8   :  { %p487_p12 = pnand %p486_p11, %p480_p8 }
  0xf9   :  { %v325_v7 = vadd.f32 %v324_v5, %v310_v3  ;;  %v286_v8 = vadd.f32 %v445_v40, %v285_v4 }
  0xfb   :  { %v287_v10 = vadd.f32 %v286_v8, %v248_v51  ;;  %v326_v11 = vadd.f32 %v325_v7, %v311_v6 }
  0xfd   :  { %v288_v13 = vadd.f32 %v448_v50, %v287_v10  ;;  %v327_v14 = vadd.f32 %v326_v11, %v312_v9 }
  0xff   :  { %v289_v15 = vrot.slane %v288_v13, 4  ;;  %v328_v16 = vadd.f32 %v327_v14, %v313_v12 }
 0x101   :  { %v290_v17 = vadd.f32 %v289_v15, %v288_v13  ;;  %v329_v18 = vrot.slane %v328_v16, 4 }
 0x103   :  { %v291_v19 = vrot.slane %v290_v17, 2  ;;  %v330_v20 = vadd.f32 %v329_v18, %v328_v16 }
 0x105   :  { %v292_v21 = vadd.f32 %v291_v19, %v290_v17  ;;  %v331_v22 = vrot.slane %v330_v20, 2 }
 0x107   :  { %v293_v23 = vrot.slane %v292_v21, 1  ;;  %v332_v24 = vadd.f32 %v331_v22, %v330_v20 }
 0x109   :  { %v294_v26 = vadd.f32 %v293_v23, %v292_v21  ;;  %v333_v27 = vrot.slane %v332_v24, 1 }
 0x10b   :  { %v295_v29 = vadd.f32 %v294_v26, %v273_v25  ;;  %v334_v30 = vadd.f32 %v333_v27, %v332_v24 }
 0x10d   :  { %296 = vst [vmem:[#allocation4] sm:$0x1] %v295_v29  ;;  %v335_v31 = vadd.f32 %v334_v30, %v297_v28 }
 0x10e   :  { %490 = shalt.err (!%p487_p12)
}
 0x10f   :  { %s491_s14 = scalar_lea.hbm %s689_s3, 128 }
 0x110   :  { %p492_p13 = scmp.ne.s32.totalorder %s689_s3, %s491_s14  ;;  %p495_p0 = scmp.lt.u32.totalorder %s491_s14, %s689_s3 }
 0x112   :  { %p497_p1 = pnand %p495_p0, %p492_p13 }
 0x114   :  { %500 = shalt.err (!%p497_p1)
}
 0x115   :  { %362 = dma.vmem_to_hbm [thread:$0]  %s360_s8, 128, %s689_s3, [#allocation5]   ;;  %336 = vst [vmem:[#allocation6] sm:$0x1] %v335_v31 }
 0x116   :  { %s501_s21 = scalar_lea.vmem %s370_s10, 128  ;;  %p506_p3 = scmp.lt.s32.totalorder %s370_s10, %s370_s10 }
 0x117   :  { %p502_p2 = scmp.ne.s32.totalorder %s370_s10, %s501_s21  ;;  %p507_p4 = scmp.lt.s32.totalorder %s501_s21, %s501_s21 }
 0x119   :  { %p508_p5 = por %p507_p4, %p506_p3 }
 0x11b   :  { %p509_p6 = pnand %p508_p5, %p502_p2 }
 0x11d   :  { %512 = shalt.err (!%p509_p6)
}
 0x11e   :  { %s513_s1 = scalar_lea.hbm %s690_s4, 128 }
 0x11f   :  { %p514_p7 = scmp.ne.s32.totalorder %s690_s4, %s513_s1  ;;  %p517_p8 = scmp.lt.u32.totalorder %s513_s1, %s690_s4 }
 0x121   :  { %p519_p9 = pnand %p517_p8, %p514_p7 }
 0x123   :  { %522 = shalt.err (!%p519_p9)
}
 0x124   :  { %372 = dma.vmem_to_hbm [thread:$0]  %s370_s10, 128, %s690_s4, [#allocation5]  }
 0x125   :  { %523 = dma.done.wait [#allocation3], 2048  }
 0x126   :  { %524 = vsyncadd [#allocation3], 4294965248 }
 0x127   :  { %525 = dma.done.wait [#allocation5], 256  }
 0x128   :  { %526 = vsyncadd [#allocation5], 4294967040 }
 0x129   :  { %382 = vsyncpa [#allocation3], 1 }
 0x12a   :  { %383 = vsyncpa [#allocation5], 1 }

</bundles_post_ra>
